<compile_context>
chip_gen: v6e
topology: v6e:2x2x1
jax: 0.10.0
libtpu: 0.0.40
codegen_flags: <defaults>
</compile_context>

<pallas_src>
import math

import jax
import jax.numpy as jnp
from jax.experimental import pallas as pl
from jax.experimental.pallas import tpu as pltpu


def _round_up(x, m):
    return ((x + m - 1) // m) * m


# ---------------------------------------------------------------------------
# Parameter packing: three independent MLPs -> one block-structured fused MLP
# stored in a single tile-aligned (rows_total, HP) f32 slab.
# Column order everywhere: [critic1 | critic2 | actor].
# Head output order:       [q1 | q2 | policy_params].
# One-time host-side cost, done once per parameter update.
# ---------------------------------------------------------------------------
def pack_sac_params(actor_params, critic1_params, critic2_params, state_dim, action_dim):
    a_w1, a_b1, a_w2, a_b2, a_w3, a_b3 = actor_params
    c1_w1, c1_b1, c1_w2, c1_b2, c1_w3, c1_b3 = critic1_params
    c2_w1, c2_b1, c2_w2, c2_b2, c2_w3, c2_b3 = critic2_params

    hidden = a_w2.shape[0]
    h3 = 3 * hidden
    hp = _round_up(h3, 128)           # fused hidden padded to full lane width
    pol_dim = a_w3.shape[1]           # 2 * action_dim
    out_dim = 2 + pol_dim

    sp = _round_up(state_dim, 8)      # sublane-aligned row counts inside the slab
    ap = _round_up(action_dim, 8)

    off_w1s = 0
    off_w1a = off_w1s + sp
    off_b1 = off_w1a + ap
    off_w2 = off_b1 + 8
    off_b2 = off_w2 + hp
    off_w3 = off_b2 + 8
    off_b3 = off_w3 + hp
    total_rows = off_b3 + 8

    slab = jnp.zeros((total_rows, hp), jnp.float32)

    # Layer 1: split by input rows (states rows / action rows). Actor takes no action
    # input -> its action-row block is zero.
    w1s = jnp.concatenate([c1_w1[:state_dim], c2_w1[:state_dim], a_w1], axis=1)
    w1a = jnp.concatenate(
        [c1_w1[state_dim:], c2_w1[state_dim:],
         jnp.zeros((action_dim, hidden), jnp.float32)],
        axis=1,
    )
    b1 = jnp.concatenate([c1_b1, c2_b1, a_b1], axis=1)
    slab = slab.at[off_w1s:off_w1s + state_dim, :h3].set(w1s)
    slab = slab.at[off_w1a:off_w1a + action_dim, :h3].set(w1a)
    slab = slab.at[off_b1, :h3].set(b1[0])

    # Layer 2: block-diagonal (3H, 3H) inside the (HP, HP) tile; padded rows/cols zero.
    slab = slab.at[off_w2 + 0 * hidden:off_w2 + 1 * hidden, 0 * hidden:1 * hidden].set(c1_w2)
    slab = slab.at[off_w2 + 1 * hidden:off_w2 + 2 * hidden, 1 * hidden:2 * hidden].set(c2_w2)
    slab = slab.at[off_w2 + 2 * hidden:off_w2 + 3 * hidden, 2 * hidden:3 * hidden].set(a_w2)
    b2 = jnp.concatenate([c1_b2, c2_b2, a_b2], axis=1)
    slab = slab.at[off_b2, :h3].set(b2[0])

    # Heads: (3H, out_dim) block matrix inside the (HP, HP) tile.
    slab = slab.at[off_w3 + 0 * hidden:off_w3 + 1 * hidden, 0:1].set(c1_w3)
    slab = slab.at[off_w3 + 1 * hidden:off_w3 + 2 * hidden, 1:2].set(c2_w3)
    slab = slab.at[off_w3 + 2 * hidden:off_w3 + 3 * hidden, 2:out_dim].set(a_w3)
    b3 = jnp.concatenate([c1_b3, c2_b3, a_b3], axis=1)
    slab = slab.at[off_b3, :out_dim].set(b3[0])

    meta = dict(
        state_dim=state_dim, action_dim=action_dim,
        state_rows=sp, action_rows=ap,
        hidden_pad=hp, out_dim=out_dim, total_rows=total_rows,
        off_w1s=off_w1s, off_w1a=off_w1a, off_b1=off_b1,
        off_w2=off_w2, off_b2=off_b2, off_w3=off_w3, off_b3=off_b3,
    )
    return slab, meta


# ---------------------------------------------------------------------------
# Fused Pallas kernel: critic1 + critic2 + actor as one 3-layer block-MLP.
# Signature: (states, action, params_slab) -> packed [q1 | q2 | policy_params].
# ---------------------------------------------------------------------------
def _make_kernel(meta):
    s_dim = meta["state_dim"]
    a_dim = meta["action_dim"]
    sp = meta["state_rows"]
    ap = meta["action_rows"]
    hp = meta["hidden_pad"]
    out_dim = meta["out_dim"]
    o_w1s, o_w1a, o_b1 = meta["off_w1s"], meta["off_w1a"], meta["off_b1"]
    o_w2, o_b2, o_w3, o_b3 = meta["off_w2"], meta["off_b2"], meta["off_w3"], meta["off_b3"]

    def kernel(s_ref, a_ref, p_ref, o_ref):
        # Tile-aligned static ref slices (zero-cost views); trim on the VALUE only.
        w1s = p_ref[o_w1s:o_w1s + sp, :][:s_dim, :]
        w1a = p_ref[o_w1a:o_w1a + ap, :][:a_dim, :]
        b1 = p_ref[o_b1:o_b1 + 8, :][0:1, :]
        w2 = p_ref[o_w2:o_w2 + hp, :]
        b2 = p_ref[o_b2:o_b2 + 8, :][0:1, :]
        w3 = p_ref[o_w3:o_w3 + hp, :]
        b3 = p_ref[o_b3:o_b3 + 8, :][0:1, :]

        # Layer 1: split matmul replaces the host-side concat([states, action]).
        h1 = (
            jnp.dot(s_ref[...], w1s, preferred_element_type=jnp.float32)
            + jnp.dot(a_ref[...], w1a, preferred_element_type=jnp.float32)
            + b1
        )
        h1 = jnp.maximum(h1, 0.0)
        # Layer 2: block-diagonal, exactly one 128x128 MXU tile.
        h2 = jnp.maximum(
            jnp.dot(h1, w2, preferred_element_type=jnp.float32) + b2, 0.0
        )
        # Heads: block matrix -> take the first out_dim lanes of the padded result.
        head = jnp.dot(h2, w3, preferred_element_type=jnp.float32) + b3
        o_ref[...] = head[:, :out_dim]

    return kernel


def make_fused_sac_forward(meta, *, batch_tile=512):
    """Build a jitted forward: (states, action, param_slab) -> (q1, q2, policy_params).

    batch_tile: batch sizes above this use a 1-D batch grid with VMEM-resident
    weights and "parallel" semantics (v7x 2-TC sharding). Size it against the
    scoped-VMEM default of the target generation (v5e 16 MiB / v6e 32 MiB /
    v7x 32 MiB of 64 MiB physical); 512 fits all three with large headroom here.
    """
    kernel = _make_kernel(meta)
    s_dim = meta["state_dim"]
    a_dim = meta["action_dim"]
    hp = meta["hidden_pad"]
    out_dim = meta["out_dim"]
    total_rows = meta["total_rows"]

    @jax.jit
    def forward(states, action, slab):
        batch = states.shape[0]
        flops = 2 * batch * (s_dim * hp + a_dim * hp + hp * hp + hp * hp)
        bytes_accessed = 4 * (
            batch * s_dim + batch * a_dim + total_rows * hp + batch * out_dim
        )
        ce = pl.CostEstimate(
            flops=flops, transcendentals=0, bytes_accessed=bytes_accessed
        )
        out_shape = jax.ShapeDtypeStruct((batch, out_dim), jnp.float32)

        if batch > batch_tile and batch % 8 == 0:
            # Batch-gridded path: pipelines states/action DMA + output writeback,
            # keeps the weight slab resident (constant index_map), and lets the
            # "parallel" axis shard across TensorCores on v7x.
            tb = batch_tile
            packed_out = pl.pallas_call(
                kernel,
                out_shape=out_shape,
                grid=(pl.cdiv(batch, tb),),
                in_specs=[
                    pl.BlockSpec((tb, s_dim), lambda i: (i, 0)),
                    pl.BlockSpec((tb, a_dim), lambda i: (i, 0)),
                    pl.BlockSpec((total_rows, hp), lambda i: (0, 0)),
                ],
                out_specs=pl.BlockSpec((tb, out_dim), lambda i: (i, 0)),
                compiler_params=pltpu.CompilerParams(
                    dimension_semantics=("parallel",)
                ),
                cost_estimate=ce,
            )(states, action, slab)
        else:
            # Tiny-batch (per-env-step) path: single shot, everything in VMEM.
            vmem = pl.BlockSpec(memory_space=pltpu.MemorySpace.VMEM)
            packed_out = pl.pallas_call(
                kernel,
                out_shape=out_shape,
                in_specs=[vmem, vmem, vmem],
                out_specs=vmem,
                cost_estimate=ce,
            )(states, action, slab)

        q1 = packed_out[:, 0:1]
        q2 = packed_out[:, 1:2]
        policy_params = packed_out[:, 2:]
        # TODO(synk): policy_dist(policy_params) builds a torch Distribution
        # (e.g. TanhGaussian); no Pallas equivalent, so raw params are returned.
        return q1, q2, policy_params

    return forward


# ---------------------------------------------------------------------------
# Parameter construction (mirrors fanin_uniform weight init and constant(0.1)
# bias init on the LinearHead; FCBody layers use the same fanin-uniform scheme).
# Per-network params are kept for reference checking.
# ---------------------------------------------------------------------------
def _linear_params(key, fan_in, fan_out, head=False):
    kw, kb = jax.random.split(key)
    bound = 1.0 / math.sqrt(fan_in)
    w = jax.random.uniform(
        kw, (fan_in, fan_out), minval=-bound, maxval=bound, dtype=jnp.float32
    )
    if head:
        b = jnp.full((1, fan_out), 0.1, dtype=jnp.float32)  # constant(0.1)
    else:
        b = jax.random.uniform(
            kb, (1, fan_out), minval=-bound, maxval=bound, dtype=jnp.float32
        )
    return w, b


def make_mlp_params(key, in_dim, hidden, out_dim):
    k1, k2, k3 = jax.random.split(key, 3)
    w1, b1 = _linear_params(k1, in_dim, hidden)
    w2, b2 = _linear_params(k2, hidden, hidden)
    w3, b3 = _linear_params(k3, hidden, out_dim, head=True)
    return (w1, b1, w2, b2, w3, b3)


if __name__ == "__main__":
    # Small shapes consistent with the module's forward.
    B, S, A, H = 8, 16, 6, 32
    key = jax.random.PRNGKey(0)
    k_s, k_a, k_actor, k_c1, k_c2, k_s2, k_a2 = jax.random.split(key, 7)

    states = jax.random.normal(k_s, (B, S), dtype=jnp.float32)
    action = jax.random.normal(k_a, (B, A), dtype=jnp.float32)

    actor_params = make_mlp_params(k_actor, S, H, 2 * A)  # mean, log_std
    critic1_params = make_mlp_params(k_c1, S + A, H, 1)
    critic2_params = make_mlp_params(k_c2, S + A, H, 1)

    slab, meta = pack_sac_params(actor_params, critic1_params, critic2_params, S, A)

    # Pure-JAX reference (original, unfused per-network params).
    def ref_mlp(x, p):
        w1, b1, w2, b2, w3, b3 = p
        h = jnp.maximum(x @ w1 + b1, 0.0)
        h = jnp.maximum(h @ w2 + b2, 0.0)
        return h @ w3 + b3

    # --- Path 1: tiny batch (gridless, single VMEM shot) ---
    forward = make_fused_sac_forward(meta, batch_tile=512)
    q1, q2, policy_params = forward(states, action, slab)
    jax.block_until_ready((q1, q2, policy_params))

    assert q1.shape == (B, 1) and q2.shape == (B, 1)
    assert policy_params.shape == (B, 2 * A)

    sa = jnp.concatenate([states, action], axis=1)
    assert jnp.allclose(q1, ref_mlp(sa, critic1_params), atol=1e-4)
    assert jnp.allclose(q2, ref_mlp(sa, critic2_params), atol=1e-4)
    assert jnp.allclose(policy_params, ref_mlp(states, actor_params), atol=1e-4)

    # --- Path 2: larger batch exercises the batch grid (resident weights,
    #             parallel semantics) ---
    B2, TB = 256, 64
    states2 = jax.random.normal(k_s2, (B2, S), dtype=jnp.float32)
    action2 = jax.random.normal(k_a2, (B2, A), dtype=jnp.float32)
    forward_grid = make_fused_sac_forward(meta, batch_tile=TB)
    q1b, q2b, ppb = forward_grid(states2, action2, slab)
    jax.block_until_ready((q1b, q2b, ppb))

    sa2 = jnp.concatenate([states2, action2], axis=1)
    assert jnp.allclose(q1b, ref_mlp(sa2, critic1_params), atol=1e-4)
    assert jnp.allclose(q2b, ref_mlp(sa2, critic2_params), atol=1e-4)
    assert jnp.allclose(ppb, ref_mlp(states2, actor_params), atol=1e-4)

    print("KERNEL_OK")
</pallas_src>

<mosaic_0001>
module attributes {stable_mosaic.version = 11 : i64} {
  func.func @kernel(%arg0: memref<8x16xf32, #tpu.memory_space<vmem>>, %arg1: memref<8x6xf32, #tpu.memory_space<vmem>>, %arg2: memref<304x128xf32, #tpu.memory_space<vmem>>, %arg3: memref<8x14xf32, #tpu.memory_space<vmem>>) attributes {dimension_semantics = [], scalar_prefetch = 0 : i64, scratch_operands = 0 : i64, tpu.core_type = #tpu.core_type<tc>} {
    %c0 = arith.constant 0 : index
    %c0_0 = arith.constant 0 : index
    %0 = vector.load %arg2[%c0, %c0_0] : memref<304x128xf32, #tpu.memory_space<vmem>>, vector<16x128xf32>
    %c16 = arith.constant 16 : index
    %c0_1 = arith.constant 0 : index
    %1 = vector.load %arg2[%c16, %c0_1] : memref<304x128xf32, #tpu.memory_space<vmem>>, vector<8x128xf32>
    %2 = vector.extract_strided_slice %1 {offsets = [0, 0], sizes = [6, 128], strides = [1, 1]} : vector<8x128xf32> to vector<6x128xf32>
    %c24 = arith.constant 24 : index
    %c0_2 = arith.constant 0 : index
    %3 = vector.load %arg2[%c24, %c0_2] : memref<304x128xf32, #tpu.memory_space<vmem>>, vector<8x128xf32>
    %4 = vector.extract_strided_slice %3 {offsets = [0, 0], sizes = [1, 128], strides = [1, 1]} : vector<8x128xf32> to vector<1x128xf32>
    %c32 = arith.constant 32 : index
    %c0_3 = arith.constant 0 : index
    %5 = vector.load %arg2[%c32, %c0_3] : memref<304x128xf32, #tpu.memory_space<vmem>>, vector<128x128xf32>
    %c160 = arith.constant 160 : index
    %c0_4 = arith.constant 0 : index
    %6 = vector.load %arg2[%c160, %c0_4] : memref<304x128xf32, #tpu.memory_space<vmem>>, vector<8x128xf32>
    %7 = vector.extract_strided_slice %6 {offsets = [0, 0], sizes = [1, 128], strides = [1, 1]} : vector<8x128xf32> to vector<1x128xf32>
    %c168 = arith.constant 168 : index
    %c0_5 = arith.constant 0 : index
    %8 = vector.load %arg2[%c168, %c0_5] : memref<304x128xf32, #tpu.memory_space<vmem>>, vector<128x128xf32>
    %c296 = arith.constant 296 : index
    %c0_6 = arith.constant 0 : index
    %9 = vector.load %arg2[%c296, %c0_6] : memref<304x128xf32, #tpu.memory_space<vmem>>, vector<8x128xf32>
    %10 = vector.extract_strided_slice %9 {offsets = [0, 0], sizes = [1, 128], strides = [1, 1]} : vector<8x128xf32> to vector<1x128xf32>
    %c0_7 = arith.constant 0 : index
    %c0_8 = arith.constant 0 : index
    %11 = vector.load %arg0[%c0_7, %c0_8] : memref<8x16xf32, #tpu.memory_space<vmem>>, vector<8x16xf32>
    %cst = arith.constant dense<0.000000e+00> : vector<8x128xf32>
    %12 = tpu.matmul %11, %0, %cst {dimension_numbers = #tpu.dot_dimension_numbers<[1], [0], [0], [1], [0, 0, 1, 1], [], []>} : vector<8x16xf32>, vector<16x128xf32>, vector<8x128xf32> -> vector<8x128xf32>
    %c0_9 = arith.constant 0 : index
    %c0_10 = arith.constant 0 : index
    %13 = vector.load %arg1[%c0_9, %c0_10] : memref<8x6xf32, #tpu.memory_space<vmem>>, vector<8x6xf32>
    %cst_11 = arith.constant dense<0.000000e+00> : vector<8x128xf32>
    %14 = tpu.matmul %13, %2, %cst_11 {dimension_numbers = #tpu.dot_dimension_numbers<[1], [0], [0], [1], [0, 0, 1, 1], [], []>} : vector<8x6xf32>, vector<6x128xf32>, vector<8x128xf32> -> vector<8x128xf32>
    %15 = arith.addf %12, %14 : vector<8x128xf32>
    %16 = vector.broadcast %4 : vector<1x128xf32> to vector<8x128xf32>
    %17 = arith.addf %15, %16 : vector<8x128xf32>
    %cst_12 = arith.constant 0.000000e+00 : f32
    %18 = vector.broadcast %cst_12 : f32 to vector<8x128xf32>
    %19 = arith.maximumf %17, %18 : vector<8x128xf32>
    %cst_13 = arith.constant dense<0.000000e+00> : vector<8x128xf32>
    %20 = tpu.matmul %19, %5, %cst_13 {dimension_numbers = #tpu.dot_dimension_numbers<[1], [0], [0], [1], [0, 0, 1, 1], [], []>} : vector<8x128xf32>, vector<128x128xf32>, vector<8x128xf32> -> vector<8x128xf32>
    %21 = vector.broadcast %7 : vector<1x128xf32> to vector<8x128xf32>
    %22 = arith.addf %20, %21 : vector<8x128xf32>
    %cst_14 = arith.constant 0.000000e+00 : f32
    %23 = vector.broadcast %cst_14 : f32 to vector<8x128xf32>
    %24 = arith.maximumf %22, %23 : vector<8x128xf32>
    %cst_15 = arith.constant dense<0.000000e+00> : vector<8x128xf32>
    %25 = tpu.matmul %24, %8, %cst_15 {dimension_numbers = #tpu.dot_dimension_numbers<[1], [0], [0], [1], [0, 0, 1, 1], [], []>} : vector<8x128xf32>, vector<128x128xf32>, vector<8x128xf32> -> vector<8x128xf32>
    %26 = vector.broadcast %10 : vector<1x128xf32> to vector<8x128xf32>
    %27 = arith.addf %25, %26 : vector<8x128xf32>
    %28 = vector.extract_strided_slice %27 {offsets = [0, 0], sizes = [8, 14], strides = [1, 1]} : vector<8x128xf32> to vector<8x14xf32>
    %c0_16 = arith.constant 0 : index
    %c0_17 = arith.constant 0 : index
    %29 = vector.load %arg3[%c0_16, %c0_17] : memref<8x14xf32, #tpu.memory_space<vmem>>, vector<8x14xf32>
    tpu.vector_store %arg3[%c0_16, %c0_17], %28 {strides = array<i32>} : memref<8x14xf32, #tpu.memory_space<vmem>>, vector<8x14xf32>,
    return
  }
}

</mosaic_0001>

<bundles_post_ra>
// kernel: forward.1
= control target key start
LH: loop header
LB: loop body
LE: loop exit
PB: predicated region body
PF: predicated region fallthrough
CT: control target
= control target key end

     0   :  { %8 = vsyncpa [#allocation3], 0  ;;  %s683_s0 = inlined_call_operand.hbm [shape: f32[8,16], index: 0, kind: input, shape index: {}]   ;;  %s684_s1 = inlined_call_operand.hbm [shape: f32[8,6], index: 1, kind: input, shape index: {}]   ;;  %s685_s2 = inlined_call_operand.hbm [shape: f32[304,128], index: 2, kind: input, shape index: {}]   ;;  %s686_s3 = inlined_call_operand.vmem [shape: f32[8,14], index: 3, kind: output, shape index: {}]  }
   0x1   :  { %9 = vsyncpa [#allocation5], 0  ;;  %s601_s12 = smov [#allocation4]   ;;  %s602_s14 = smov [#allocation2]  }
   0x2   :  { %s26_s13 = sshll.u32 %s601_s12, 4  ;;  %s16_s15 = sshll.u32 %s602_s14, 4  ;;  %s27_s13 = int_to_ptr.vmem [resolvable:$true] %s26_s13  ;;  %s17_s15 = int_to_ptr.vmem [resolvable:$true] %s16_s15 }
   0x3   :  { %s545_s16 = scalar_lea.vmem %s27_s13, 128  ;;  %p550_p1 = scmp.lt.s32.totalorder %s27_s13, %s27_s13 }
   0x4   :  { %p546_p0 = scmp.ne.s32.totalorder %s27_s13, %s545_s16  ;;  %p551_p2 = scmp.lt.s32.totalorder %s545_s16, %s545_s16 }
   0x6   :  { %p552_p3 = por %p551_p2, %p550_p1 }
   0x8   :  { %p553_p4 = pnand %p552_p3, %p546_p0 }
   0xa   :  { %556 = shalt.err (!%p553_p4)
}
   0xb   :  { %29 = dma.hbm_to_vmem [thread:$0]  %s684_s1, 128, %s27_s13, [#allocation5]  }
   0xc   :  { %s565_s19 = scalar_lea.vmem %s17_s15, 128  ;;  %p570_p6 = scmp.lt.s32.totalorder %s17_s15, %s17_s15 }
   0xd   :  { %p566_p5 = scmp.ne.s32.totalorder %s17_s15, %s565_s19  ;;  %p571_p7 = scmp.lt.s32.totalorder %s565_s19, %s565_s19 }
   0xf   :  { %p572_p8 = por %p571_p7, %p570_p6 }
  0x11   :  { %p573_p9 = pnand %p572_p8, %p566_p5 }
  0x13   :  { %576 = shalt.err (!%p573_p9)
}
  0x14   :  { %19 = dma.hbm_to_vmem [thread:$0]  %s683_s0, 128, %s17_s15, [#allocation3]  }
  0x15   :  { %s603_s22 = smov [#allocation6]  }
  0x16   :  { %s35_s23 = sshll.u32 %s603_s22, 4  ;;  %s36_s23 = int_to_ptr.vmem [resolvable:$true] %s35_s23 }
  0x17   :  { %s585_s24 = scalar_lea.vmem %s36_s23, 4864  ;;  %p590_p11 = scmp.lt.s32.totalorder %s36_s23, %s36_s23 }
  0x18   :  { %p586_p10 = scmp.ne.s32.totalorder %s36_s23, %s585_s24  ;;  %p591_p12 = scmp.lt.s32.totalorder %s585_s24, %s585_s24 }
  0x1a   :  { %p592_p13 = por %p591_p12, %p590_p11 }
  0x1c   :  { %p593_p0 = pnand %p592_p13, %p586_p10 }
  0x1e   :  { %596 = shalt.err (!%p593_p0)
}
  0x1f   :  { %s604_s1 = smov 128   ;;  %s605_s25 = smov 8  }
  0x20   :  { %41 = dma.hbm_to_vmem [thread:$0]  %s685_s2, 4864, %s36_s23, [#allocation5], %s604_s1, %s604_s1, %s605_s25  }
  0x21   :  { %597 = dma.done.wait [#allocation3], 128  }
  0x22   :  { %598 = vsyncadd [#allocation3], 4294967168 }
  0x23   :  { %599 = dma.done.wait [#allocation5], 4992  }
  0x24   :  { %600 = vsyncadd [#allocation5], 4294962304  ;;  %v606_v0 = vmov 0.0   ;;  %vm607_vm0 = vmmov 0   ;;  %vm95_vm1 = vcmask 1045504   ;;  %vm91_vm2 = vcmask 48128  }
  0x25   :  { %448 = vmatprep.subr.mxu0 %v606_v0  ;;  %453 = vmatprep.subr.mxu1 %v606_v0  ;;  %v53_v1 = vld [vmem:[#allocation6 + $0x10] sm:$0xff]  ;;  %v52_v2 = vld [vmem:[#allocation6 + $0x8] sm:$0xff]  ;;  %v90_v3 = vld [vmem:[#allocation4] sm:$0xff]  ;;  %vm169_vm3 = vcmask 130048   ;;  %v243_v35 = vlaneseq  ;;  %vm398_vm4 = vcmask 113664  }
  0x26   :  { %450 = vmatprep.mubr.msk.f32.mxu0 %vm607_vm0, %v606_v0  ;;  %457 = vmatprep.mubr.msk.f32.mxu1 %vm607_vm0, %v606_v0  ;;  %v51_v4 = vld [vmem:[#allocation6] sm:$0xff]  ;;  %v89_v5 = vld [vmem:[#allocation2] sm:$0xff]  ;;  %v70_v6 = vld [vmem:[#allocation6 + $0x98] sm:$0xff] }
  0x27   :  { %449 = vmatpush3.msk.msra.mxu0 %vm95_vm1, %v53_v1  ;;  %454 = vmatpush3.msra.mxu1 %v52_v2  ;;  %v69_v7 = vld [vmem:[#allocation6 + $0x90] sm:$0xff]  ;;  %v68_v8 = vld [vmem:[#allocation6 + $0x88] sm:$0xff]  ;;  %v67_v9 = vld [vmem:[#allocation6 + $0x80] sm:$0xff]  ;;  %v244_v36 = vshrl.u32 %v243_v35, 7 }
  0x28   :  { %451 = vmatmul.mubr.msk.f32.vlgmr.msra.gmra.mxu0 %vm91_vm2, %v90_v3  ;;  %455 = vmatprep.subr.mxu1 %v606_v0  ;;  %v66_v10 = vld [vmem:[#allocation6 + $0x78] sm:$0xff]  ;;  %v65_v11 = vld [vmem:[#allocation6 + $0x70] sm:$0xff]  ;;  %v64_v12 = vld [vmem:[#allocation6 + $0x68] sm:$0xff] }
  0x29   :  { %456 = vmatpush3.msra.mxu1 %v51_v4  ;;  %460 = vmatprep.subr.mxu0 %v606_v0  ;;  %v63_v13 = vld [vmem:[#allocation6 + $0x60] sm:$0xff]  ;;  %v62_v14 = vld [vmem:[#allocation6 + $0x58] sm:$0xff]  ;;  %v61_v15 = vld [vmem:[#allocation6 + $0x50] sm:$0xff]  ;;  %v245_v37 = vsub.s32 0, %v244_v36 }
  0x2a   :  { %458 = vmatmul.mubr.msk.f32.vlgmr.msra.gmra.mxu1 %vm169_vm3, %v89_v5  ;;  %461 = vmatpush3.msra.mxu0 %v70_v6  ;;  %v60_v16 = vld [vmem:[#allocation6 + $0x48] sm:$0xff]  ;;  %v59_v17 = vld [vmem:[#allocation6 + $0x40] sm:$0xff]  ;;  %v58_v18 = vld [vmem:[#allocation6 + $0x38] sm:$0xff] }
  0x2b   :  { %462 = vmatprep.subr.mxu0 %v606_v0  ;;  %492 = vmatprep.mubr.msk.f32.mxu0 %vm607_vm0, %v606_v0  ;;  %v57_v19 = vld [vmem:[#allocation6 + $0x30] sm:$0xff]  ;;  %v56_v20 = vld [vmem:[#allocation6 + $0x28] sm:$0xff]  ;;  %v55_v21 = vld [vmem:[#allocation6 + $0x20] sm:$0xff] }
  0x2c   :  { %463 = vmatpush3.msra.mxu0 %v69_v7  ;;  %495 = vmatprep.subr.mxu1 %v606_v0  ;;  %v87_v22 = vld [vmem:[#allocation6 + $0x120] sm:$0xff]  ;;  %v86_v23 = vld [vmem:[#allocation6 + $0x118] sm:$0xff]  ;;  %v85_v24 = vld [vmem:[#allocation6 + $0x110] sm:$0xff] }
  0x2d   :  { %464 = vmatprep.subr.mxu0 %v606_v0  ;;  %527 = vmatprep.mubr.msk.f32.mxu1 %vm607_vm0, %v606_v0  ;;  %v84_v25 = vld [vmem:[#allocation6 + $0x108] sm:$0xff]  ;;  %v83_v26 = vld [vmem:[#allocation6 + $0x100] sm:$0xff]  ;;  %v82_v27 = vld [vmem:[#allocation6 + $0xf8] sm:$0xff] }
  0x2e   :  { %465 = vmatpush3.msra.mxu0 %v68_v8  ;;  %496 = vmatpush3.msra.mxu1 %v87_v22  ;;  %v81_v28 = vld [vmem:[#allocation6 + $0xf0] sm:$0xff]  ;;  %v80_v29 = vld [vmem:[#allocation6 + $0xe8] sm:$0xff]  ;;  %v79_v30 = vld [vmem:[#allocation6 + $0xe0] sm:$0xff] }
  0x2f   :  { %466 = vmatprep.subr.mxu0 %v606_v0  ;;  %497 = vmatprep.subr.mxu1 %v606_v0  ;;  %v78_v31 = vld [vmem:[#allocation6 + $0xd8] sm:$0xff]  ;;  %v77_v32 = vld [vmem:[#allocation6 + $0xd0] sm:$0xff]  ;;  %v76_v33 = vld [vmem:[#allocation6 + $0xc8] sm:$0xff] }
  0x30   :  { %467 = vmatpush3.msra.mxu0 %v67_v9  ;;  %498 = vmatpush3.msra.mxu1 %v86_v23  ;;  %v75_v34 = vld [vmem:[#allocation6 + $0xc0] sm:$0xff]  ;;  %v54_v38 = vld [vmem:[#allocation6 + $0x18] sm:$0xff]  ;;  %v73_v48 = vld [vmem:[#allocation6 + $0xb0] sm:$0xff] }
  0x31   :  { %468 = vmatprep.subr.mxu0 %v606_v0  ;;  %499 = vmatprep.subr.mxu1 %v606_v0  ;;  %v246_v40 = vrot.slane %v54_v38, %v245_v37  ;;  %v74_v47 = vld [vmem:[#allocation6 + $0xb8] sm:$0xff]  ;;  %v72_v49 = vld [vmem:[#allocation6 + $0xa8] sm:$0xff]  ;;  %v71_v50 = vld [vmem:[#allocation6 + $0xa0] sm:$0xff] }
  0x32   :  { %469 = vmatpush3.msra.mxu0 %v66_v10  ;;  %500 = vmatpush3.msra.mxu1 %v85_v24  ;;  %v252_v51 = vrot.slane %v71_v50, %v245_v37  ;;  %v88_v56 = vld [vmem:[#allocation6 + $0x128] sm:$0xff] }
  0x33   :  { %470 = vmatprep.subr.mxu0 %v606_v0  ;;  %501 = vmatprep.subr.mxu1 %v606_v0  ;;  %v327_v57 = vrot.slane %v88_v56, %v245_v37 }
  0x34   :  { %471 = vmatpush3.msra.mxu0 %v65_v11  ;;  %502 = vmatpush3.msra.mxu1 %v84_v25 }
  0x35   :  { %472 = vmatprep.subr.mxu0 %v606_v0  ;;  %503 = vmatprep.subr.mxu1 %v606_v0 }
  0x36   :  { %473 = vmatpush3.msra.mxu0 %v64_v12  ;;  %504 = vmatpush3.msra.mxu1 %v83_v26 }
  0x37   :  { %474 = vmatprep.subr.mxu0 %v606_v0  ;;  %505 = vmatprep.subr.mxu1 %v606_v0 }
  0x38   :  { %475 = vmatpush3.msra.mxu0 %v63_v13  ;;  %506 = vmatpush3.msra.mxu1 %v82_v27 }
  0x39   :  { %476 = vmatprep.subr.mxu0 %v606_v0  ;;  %507 = vmatprep.subr.mxu1 %v606_v0 }
  0x3a   :  { %477 = vmatpush3.msra.mxu0 %v62_v14  ;;  %508 = vmatpush3.msra.mxu1 %v81_v28 }
  0x3b   :  { %478 = vmatprep.subr.mxu0 %v606_v0  ;;  %509 = vmatprep.subr.mxu1 %v606_v0 }
  0x3c   :  { %479 = vmatpush3.msra.mxu0 %v61_v15  ;;  %510 = vmatpush3.msra.mxu1 %v80_v29 }
  0x3d   :  { %480 = vmatprep.subr.mxu0 %v606_v0  ;;  %511 = vmatprep.subr.mxu1 %v606_v0 }
  0x3e   :  { %481 = vmatpush3.msra.mxu0 %v60_v16  ;;  %512 = vmatpush3.msra.mxu1 %v79_v30 }
  0x3f   :  { %482 = vmatprep.subr.mxu0 %v606_v0  ;;  %513 = vmatprep.subr.mxu1 %v606_v0 }
  0x40   :  { %483 = vmatpush3.msra.mxu0 %v59_v17  ;;  %514 = vmatpush3.msra.mxu1 %v78_v31 }
  0x41   :  { %484 = vmatprep.subr.mxu0 %v606_v0  ;;  %515 = vmatprep.subr.mxu1 %v606_v0 }
  0x42   :  { %485 = vmatpush3.msra.mxu0 %v58_v18  ;;  %516 = vmatpush3.msra.mxu1 %v77_v32 }
  0x43   :  { %486 = vmatprep.subr.mxu0 %v606_v0  ;;  %517 = vmatprep.subr.mxu1 %v606_v0 }
  0x44   :  { %487 = vmatpush3.msra.mxu0 %v57_v19  ;;  %518 = vmatpush3.msra.mxu1 %v76_v33 }
  0x45   :  { %488 = vmatprep.subr.mxu0 %v606_v0  ;;  %519 = vmatprep.subr.mxu1 %v606_v0 }
  0x46   :  { %489 = vmatpush3.msra.mxu0 %v56_v20  ;;  %520 = vmatpush3.msra.mxu1 %v75_v34 }
  0x47   :  { %490 = vmatprep.subr.mxu0 %v606_v0  ;;  %521 = vmatprep.subr.mxu1 %v606_v0 }
  0x48   :  { %491 = vmatpush3.msra.mxu0 %v55_v21  ;;  %522 = vmatpush3.msra.mxu1 %v74_v47 }
  0x49   :  { %523 = vmatprep.subr.mxu1 %v606_v0 }
  0x4a   :  { %524 = vmatpush3.msra.mxu1 %v73_v48 }
  0x4b   :  { %525 = vmatprep.subr.mxu1 %v606_v0 }
  0x4c   :  { %526 = vmatpush3.msra.mxu1 %v72_v49 }
  0xe8   :  { %v165_v39 = vpop.f32.mrf.mxu0 }
  0xea   :  { %v452_v41 = vpop.f32.mrf.mxu0  ;;  %v239_v42 = vpop.f32.mrf.mxu1 }
  0xeb   :  { %v240_v43 = vadd.f32 %v239_v42, %v165_v39 }
  0xec   :  { %v459_v44 = vpop.f32.mrf.mxu1 }
  0xed   :  { %v247_v45 = vadd.f32 %v246_v40, %v240_v43 }
  0xef   :  { %v248_v46 = vmax.f32 %v247_v45, 0.0 }
  0xf1   :  { %493 = vmatmul.mubr.f32.vlgmr.msra.gmra.mxu0 %v248_v46 }
 0x1b1   :  { %v319_v52 = vpop.f32.mrf.mxu0 }
 0x1b2   :  { %v320_v53 = vadd.f32 %v319_v52, %v252_v51 }
 0x1b3   :  { %v494_v54 = vpop.f32.mrf.mxu0 }
 0x1b4   :  { %v323_v55 = vmax.f32 %v320_v53, 0.0 }
 0x1b6   :  { %528 = vmatmul.mubr.f32.vlgmr.msra.gmra.mxu1 %v323_v55 }
 0x276   :  { %v394_v58 = vpop.f32.mrf.mxu1 }
 0x277   :  { %v395_v59 = vadd.f32 %v394_v58, %v327_v57 }
 0x278   :  { %v529_v60 = vpop.f32.mrf.mxu1 }
 0x279   :  { %399 = vst.msk [vmem:[%s686_s3] sm:$0xff] %vm398_vm4, %v395_v59 }
 0x27a   :  { %404 = vsyncpa [#allocation3], 1 }
 0x27b   :  { %405 = vsyncpa [#allocation5], 1 }

</bundles_post_ra>
